<compile_context>
chip_gen: v5e
topology: v5e:2x2
jax: 0.10.0
libtpu: 0.0.40
codegen_flags: <defaults>
</compile_context>

<pallas_src>
import jax
import jax.numpy as jnp
from jax.experimental import pallas as pl
from jax.experimental.pallas import tpu as pltpu

# ---- static hyperparameters ----
E_DIM = 32            # e_dim  : dictionary / latent vector dimension
H_DIM = 64            # h_dim  : FFN hidden dimension
C_DIM = 2             # c_space_dim
HEADS = 2 * C_DIM     # fused mu|sigma head width
LN_EPS = 1e-5         # torch.nn.LayerNorm default
MXU_DTYPE = jnp.bfloat16   # matmul operand dtype (f32 accumulate)
MAX_TILE_N = 1024     # rows per grid step (multiple of 8)


def _softplus(x):
    # numerically-stable softplus == F.softplus
    return jnp.maximum(x, 0.0) + jnp.log(1.0 + jnp.exp(-jnp.abs(x)))


# ---------------------------------------------------------------------------
# Fused kernel: pre-norm FFN (+residual) -> fused mu|sigma heads
#   z_ref : [T, E]    (row tile of the folded [B*L, E] input)
#   w1    : [E, H]    (LayerNorm affine already folded in, bf16)
#   b1    : [1, H]    (folded, f32)
#   w2    : [H, E]    (bf16)      b2 : [1, E] (f32)
#   wh    : [E, 2C]   (mu|sigma concatenated, bf16)   bh : [1, 2C] (f32)
#   out   : [T, 2C]   (lanes [0:C) = mu, lanes [C:2C) = var)
# ---------------------------------------------------------------------------
def decoder_prenorm_kernel(z_ref, w1_ref, b1_ref, w2_ref, b2_ref,
                           wh_ref, bh_ref, out_ref):
    x = z_ref[...].astype(jnp.float32)                               # [T, E]

    # --- LayerNorm (affine folded into W1/b1), stats in f32 ---
    mean = jnp.mean(x, axis=-1, keepdims=True)
    var = jnp.mean((x - mean) ** 2, axis=-1, keepdims=True)
    xn = (x - mean) * jax.lax.rsqrt(var + LN_EPS)

    # --- position-wise FFN with residual (bf16 MXU operands, f32 accumulate) ---
    h = jnp.dot(xn.astype(MXU_DTYPE), w1_ref[...],
                preferred_element_type=jnp.float32) + b1_ref[...]
    h = jnp.maximum(h, 0.0)
    z = (jnp.dot(h.astype(MXU_DTYPE), w2_ref[...],
                 preferred_element_type=jnp.float32)
         + b2_ref[...] + x)

    # --- fused mu|sigma heads: one [E, 2C] matmul ---
    s = jnp.dot(z.astype(MXU_DTYPE), wh_ref[...],
                preferred_element_type=jnp.float32) + bh_ref[...]    # [T, 2C]
    mu_all = (jnp.tanh(s) + 1.0) * 0.5
    var_all = _softplus(s)
    lane = jax.lax.broadcasted_iota(jnp.int32, s.shape, 1)
    out_ref[...] = jnp.where(lane < C_DIM, mu_all, var_all).astype(out_ref.dtype)


# ---------------------------------------------------------------------------
# Wrapper: fold LN affine into W1, fuse heads, grid over the row dim
# ---------------------------------------------------------------------------
def _round_up(n, m):
    return ((n + m - 1) // m) * m


@jax.jit
def decoder_prenorm(z_q, params):
    B, L, E = z_q.shape
    assert E == E_DIM
    N = B * L
    z2 = z_q.reshape(N, E)                        # fold batch into sublane dim

    tile_n = min(MAX_TILE_N, _round_up(N, 8))
    n_pad = _round_up(N, tile_n)
    if n_pad != N:
        z2 = jnp.pad(z2, ((0, n_pad - N), (0, 0)))
    grid = (n_pad // tile_n,)

    # --- parameter prep (exact algebra, tiny, traced once under jit) ---
    # LayerNorm affine folded into the first linear:
    #   (xn*g + b) @ W1 + b1 == xn @ (diag(g) W1) + (b @ W1 + b1)
    w1f = (params["ln_g"].reshape(E_DIM, 1) * params["w1"]).astype(MXU_DTYPE)
    b1f = (params["ln_b"] @ params["w1"] + params["b1"]).astype(jnp.float32)
    w2 = params["w2"].astype(MXU_DTYPE)
    b2 = params["b2"].astype(jnp.float32)
    # mu|sigma heads fused into one matmul:
    wh = jnp.concatenate([params["wmu"], params["wsig"]], axis=1).astype(MXU_DTYPE)
    bh = jnp.concatenate([params["bmu"], params["bsig"]], axis=1).astype(jnp.float32)

    const = lambda i: (0, 0)                      # weights resident across steps
    flops = 2 * n_pad * (E_DIM * H_DIM + H_DIM * E_DIM + E_DIM * HEADS)
    transcendentals = n_pad * HEADS * 2           # tanh + exp per head lane
    bytes_accessed = (n_pad * (E_DIM + HEADS) * 4
                      + (w1f.size + w2.size + wh.size) * 2
                      + (b1f.size + b2.size + bh.size) * 4)

    heads = pl.pallas_call(
        decoder_prenorm_kernel,
        out_shape=jax.ShapeDtypeStruct((n_pad, HEADS), z_q.dtype),
        grid_spec=pltpu.PrefetchScalarGridSpec(
            num_scalar_prefetch=0,
            grid=grid,
            in_specs=[
                pl.BlockSpec((tile_n, E_DIM), lambda i: (i, 0)),   # z rows (streamed)
                pl.BlockSpec((E_DIM, H_DIM), const),               # W1'
                pl.BlockSpec((1, H_DIM), const),                   # b1'
                pl.BlockSpec((H_DIM, E_DIM), const),               # W2
                pl.BlockSpec((1, E_DIM), const),                   # b2
                pl.BlockSpec((E_DIM, HEADS), const),               # W_heads
                pl.BlockSpec((1, HEADS), const),                   # b_heads
            ],
            out_specs=pl.BlockSpec((tile_n, HEADS), lambda i: (i, 0)),
        ),
        compiler_params=pltpu.CompilerParams(
            dimension_semantics=("parallel",),      # 2 TCs on v7x; no-op v5e/v6e
            vmem_limit_bytes=32 * 1024 * 1024,
        ),
        cost_estimate=pl.CostEstimate(
            flops=flops,
            transcendentals=transcendentals,
            bytes_accessed=bytes_accessed,
        ),
    )(z2, w1f, b1f, w2, b2, wh, bh)

    heads = heads[:N]
    mu = heads[:, :C_DIM].reshape(B, L, C_DIM)
    var = heads[:, C_DIM:].reshape(B, L, C_DIM)
    return mu, var


# ---------------------------------------------------------------------------
# Pure-JAX reference (f32, matches the PyTorch module)
# ---------------------------------------------------------------------------
def decoder_prenorm_ref(z_q, p):
    mean = jnp.mean(z_q, axis=-1, keepdims=True)
    var = jnp.mean((z_q - mean) ** 2, axis=-1, keepdims=True)
    xn = (z_q - mean) * jax.lax.rsqrt(var + LN_EPS) * p["ln_g"] + p["ln_b"]
    h = jnp.maximum(xn @ p["w1"] + p["b1"], 0.0)
    z = h @ p["w2"] + p["b2"] + z_q
    mu = (jnp.tanh(z @ p["wmu"] + p["bmu"]) + 1.0) / 2.0
    sp = _softplus(z @ p["wsig"] + p["bsig"])
    return mu, sp


def init_params(key):
    ks = jax.random.split(key, 8)
    scale = 0.02
    return {
        "w1":   scale * jax.random.normal(ks[0], (E_DIM, H_DIM), jnp.float32),
        "b1":   scale * jax.random.normal(ks[1], (1, H_DIM), jnp.float32),
        "w2":   scale * jax.random.normal(ks[2], (H_DIM, E_DIM), jnp.float32),
        "b2":   scale * jax.random.normal(ks[3], (1, E_DIM), jnp.float32),
        "ln_g": jnp.ones((1, E_DIM), jnp.float32),
        "ln_b": jnp.zeros((1, E_DIM), jnp.float32),
        "wmu":  scale * jax.random.normal(ks[4], (E_DIM, C_DIM), jnp.float32),
        "bmu":  scale * jax.random.normal(ks[5], (1, C_DIM), jnp.float32),
        "wsig": scale * jax.random.normal(ks[6], (E_DIM, C_DIM), jnp.float32),
        "bsig": scale * jax.random.normal(ks[7], (1, C_DIM), jnp.float32),
    }


if __name__ == "__main__":
    key = jax.random.PRNGKey(0)
    k_z, k_p = jax.random.split(key)

    B, L = 2, 8
    z_q = jax.random.normal(k_z, (B, L, E_DIM), jnp.float32)
    params = init_params(k_p)

    mu, var = decoder_prenorm(z_q, params)
    mu, var = jax.block_until_ready((mu, var))

    mu_ref, var_ref = decoder_prenorm_ref(z_q, params)
    assert mu.shape == (B, L, C_DIM) and var.shape == (B, L, C_DIM)
    # bf16 MXU operands -> relaxed tolerance vs the f32 reference
    assert jnp.allclose(mu, mu_ref, rtol=2e-2, atol=2e-2), \
        float(jnp.max(jnp.abs(mu - mu_ref)))
    assert jnp.allclose(var, var_ref, rtol=2e-2, atol=2e-2), \
        float(jnp.max(jnp.abs(var - var_ref)))
    # sanity: mu in [0,1] (tanh mapped), var nonnegative (softplus)
    assert bool(jnp.all((mu >= 0.0) & (mu <= 1.0))) and bool(jnp.all(var >= 0.0))

    print("KERNEL_OK")
</pallas_src>

<mosaic_0001>
module attributes {stable_mosaic.version = 11 : i64} {
  func.func @decoder_prenorm_kernel(%arg0: i32, %arg1: memref<16x32xf32, #tpu.memory_space<vmem>>, %arg2: memref<32x64xbf16, #tpu.memory_space<vmem>>, %arg3: memref<1x64xf32, #tpu.memory_space<vmem>>, %arg4: memref<64x32xbf16, #tpu.memory_space<vmem>>, %arg5: memref<1x32xf32, #tpu.memory_space<vmem>>, %arg6: memref<32x4xbf16, #tpu.memory_space<vmem>>, %arg7: memref<1x4xf32, #tpu.memory_space<vmem>>, %arg8: memref<16x4xf32, #tpu.memory_space<vmem>>) attributes {dimension_semantics = [#tpu.dimension_semantics<parallel>], iteration_bounds = array<i64: 1>, scalar_prefetch = 0 : i64, scratch_operands = 0 : i64, tpu.core_type = #tpu.core_type<tc>, window_params = [{transform_indices = @transform_0, window_bounds = array<i64: 16, 32>}, {pipeline_mode = #tpu.pipeline_mode<synchronous>, transform_indices = @transform_1, window_bounds = array<i64: 32, 64>}, {pipeline_mode = #tpu.pipeline_mode<synchronous>, transform_indices = @transform_2, window_bounds = array<i64: 1, 64>}, {pipeline_mode = #tpu.pipeline_mode<synchronous>, transform_indices = @transform_3, window_bounds = array<i64: 64, 32>}, {pipeline_mode = #tpu.pipeline_mode<synchronous>, transform_indices = @transform_4, window_bounds = array<i64: 1, 32>}, {pipeline_mode = #tpu.pipeline_mode<synchronous>, transform_indices = @transform_5, window_bounds = array<i64: 32, 4>}, {pipeline_mode = #tpu.pipeline_mode<synchronous>, transform_indices = @transform_6, window_bounds = array<i64: 1, 4>}, {transform_indices = @transform_7, window_bounds = array<i64: 16, 4>}]} {
    %c0 = arith.constant 0 : index
    %c0_0 = arith.constant 0 : index
    %0 = vector.load %arg1[%c0, %c0_0] : memref<16x32xf32, #tpu.memory_space<vmem>>, vector<16x32xf32>
    %cst = arith.constant dense<0.000000e+00> : vector<16xf32>
    %1 = vector.multi_reduction <add>, %0, %cst [1] : vector<16x32xf32> to vector<16xf32>
    %2 = vector.shape_cast %1 : vector<16xf32> to vector<16x1xf32>
    %cst_1 = arith.constant 3.200000e+01 : f32
    %3 = vector.broadcast %cst_1 : f32 to vector<16x1xf32>
    %4 = arith.divf %2, %3 : vector<16x1xf32>
    %5 = vector.broadcast %4 : vector<16x1xf32> to vector<16x32xf32>
    %6 = arith.subf %0, %5 : vector<16x32xf32>
    %7 = arith.mulf %6, %6 : vector<16x32xf32>
    %cst_2 = arith.constant dense<0.000000e+00> : vector<16xf32>
    %8 = vector.multi_reduction <add>, %7, %cst_2 [1] : vector<16x32xf32> to vector<16xf32>
    %9 = vector.shape_cast %8 : vector<16xf32> to vector<16x1xf32>
    %cst_3 = arith.constant 3.200000e+01 : f32
    %10 = vector.broadcast %cst_3 : f32 to vector<16x1xf32>
    %11 = arith.divf %9, %10 : vector<16x1xf32>
    %12 = vector.broadcast %4 : vector<16x1xf32> to vector<16x32xf32>
    %13 = arith.subf %0, %12 : vector<16x32xf32>
    %cst_4 = arith.constant 9.99999974E-6 : f32
    %14 = vector.broadcast %cst_4 : f32 to vector<16x1xf32>
    %15 = arith.addf %11, %14 : vector<16x1xf32>
    %16 = math.rsqrt %15 : vector<16x1xf32>
    %17 = vector.broadcast %16 : vector<16x1xf32> to vector<16x32xf32>
    %18 = arith.mulf %13, %17 : vector<16x32xf32>
    %19 = arith.truncf %18 : vector<16x32xf32> to vector<16x32xbf16>
    %c0_5 = arith.constant 0 : index
    %c0_6 = arith.constant 0 : index
    %20 = vector.load %arg2[%c0_5, %c0_6] : memref<32x64xbf16, #tpu.memory_space<vmem>>, vector<32x64xbf16>
    %cst_7 = arith.constant dense<0.000000e+00> : vector<16x64xf32>
    %21 = tpu.matmul %19, %20, %cst_7 {dimension_numbers = #tpu.dot_dimension_numbers<[1], [0], [0], [1], [0, 0, 1, 1], [], []>} : vector<16x32xbf16>, vector<32x64xbf16>, vector<16x64xf32> -> vector<16x64xf32>
    %c0_8 = arith.constant 0 : index
    %c0_9 = arith.constant 0 : index
    %22 = vector.load %arg3[%c0_8, %c0_9] : memref<1x64xf32, #tpu.memory_space<vmem>>, vector<1x64xf32>
    %23 = vector.broadcast %22 : vector<1x64xf32> to vector<16x64xf32>
    %24 = arith.addf %21, %23 : vector<16x64xf32>
    %cst_10 = arith.constant 0.000000e+00 : f32
    %25 = vector.broadcast %cst_10 : f32 to vector<16x64xf32>
    %26 = arith.maximumf %24, %25 : vector<16x64xf32>
    %27 = arith.truncf %26 : vector<16x64xf32> to vector<16x64xbf16>
    %c0_11 = arith.constant 0 : index
    %c0_12 = arith.constant 0 : index
    %28 = vector.load %arg4[%c0_11, %c0_12] : memref<64x32xbf16, #tpu.memory_space<vmem>>, vector<64x32xbf16>
    %cst_13 = arith.constant dense<0.000000e+00> : vector<16x32xf32>
    %29 = tpu.matmul %27, %28, %cst_13 {dimension_numbers = #tpu.dot_dimension_numbers<[1], [0], [0], [1], [0, 0, 1, 1], [], []>} : vector<16x64xbf16>, vector<64x32xbf16>, vector<16x32xf32> -> vector<16x32xf32>
    %c0_14 = arith.constant 0 : index
    %c0_15 = arith.constant 0 : index
    %30 = vector.load %arg5[%c0_14, %c0_15] : memref<1x32xf32, #tpu.memory_space<vmem>>, vector<1x32xf32>
    %31 = vector.broadcast %30 : vector<1x32xf32> to vector<16x32xf32>
    %32 = arith.addf %29, %31 : vector<16x32xf32>
    %33 = arith.addf %32, %0 : vector<16x32xf32>
    %34 = arith.truncf %33 : vector<16x32xf32> to vector<16x32xbf16>
    %c0_16 = arith.constant 0 : index
    %c0_17 = arith.constant 0 : index
    %35 = vector.load %arg6[%c0_16, %c0_17] : memref<32x4xbf16, #tpu.memory_space<vmem>>, vector<32x4xbf16>
    %cst_18 = arith.constant dense<0.000000e+00> : vector<16x4xf32>
    %36 = tpu.matmul %34, %35, %cst_18 {dimension_numbers = #tpu.dot_dimension_numbers<[1], [0], [0], [1], [0, 0, 1, 1], [], []>} : vector<16x32xbf16>, vector<32x4xbf16>, vector<16x4xf32> -> vector<16x4xf32>
    %c0_19 = arith.constant 0 : index
    %c0_20 = arith.constant 0 : index
    %37 = vector.load %arg7[%c0_19, %c0_20] : memref<1x4xf32, #tpu.memory_space<vmem>>, vector<1x4xf32>
    %38 = vector.broadcast %37 : vector<1x4xf32> to vector<16x4xf32>
    %39 = arith.addf %36, %38 : vector<16x4xf32>
    %40 = math.tanh %39 : vector<16x4xf32>
    %cst_21 = arith.constant 1.000000e+00 : f32
    %41 = vector.broadcast %cst_21 : f32 to vector<16x4xf32>
    %42 = arith.addf %40, %41 : vector<16x4xf32>
    %cst_22 = arith.constant 5.000000e-01 : f32
    %43 = vector.broadcast %cst_22 : f32 to vector<16x4xf32>
    %44 = arith.mulf %42, %43 : vector<16x4xf32>
    %cst_23 = arith.constant 0.000000e+00 : f32
    %45 = vector.broadcast %cst_23 : f32 to vector<16x4xf32>
    %46 = arith.maximumf %39, %45 : vector<16x4xf32>
    %47 = math.absf %39 : vector<16x4xf32>
    %cst_24 = arith.constant 0.000000e+00 : f32
    %48 = vector.broadcast %cst_24 : f32 to vector<16x4xf32>
    %49 = arith.subf %48, %47 : vector<16x4xf32>
    %50 = math.exp %49 : vector<16x4xf32>
    %cst_25 = arith.constant 1.000000e+00 : f32
    %51 = vector.broadcast %cst_25 : f32 to vector<16x4xf32>
    %52 = arith.addf %51, %50 : vector<16x4xf32>
    %53 = math.log %52 : vector<16x4xf32>
    %54 = arith.addf %46, %53 : vector<16x4xf32>
    %55 = tpu.iota {dimensions = array<i32: 1>} : vector<16x4xi32>
    %c2_i32 = arith.constant 2 : i32
    %56 = vector.broadcast %c2_i32 : i32 to vector<16x4xi32>
    %57 = arith.cmpi slt, %55, %56 : vector<16x4xi32>
    %58 = arith.select %57, %44, %54 : vector<16x4xi1>, vector<16x4xf32>
    %c0_26 = arith.constant 0 : index
    %c0_27 = arith.constant 0 : index
    %59 = vector.load %arg8[%c0_26, %c0_27] : memref<16x4xf32, #tpu.memory_space<vmem>>, vector<16x4xf32>
    tpu.vector_store %arg8[%c0_26, %c0_27], %58 {strides = array<i32>} : memref<16x4xf32, #tpu.memory_space<vmem>>, vector<16x4xf32>,
    return
  }
  func.func @transform_0(%arg0: i32) -> (i32, i32) {
    %c0_i32 = arith.constant 0 : i32
    %c0_i32_0 = arith.constant 0 : i32
    return %arg0, %c0_i32 : i32, i32
  }
  func.func @transform_1(%arg0: i32) -> (i32, i32) {
    %c0_i32 = arith.constant 0 : i32
    %c0_i32_0 = arith.constant 0 : i32
    %c0_i32_1 = arith.constant 0 : i32
    return %c0_i32, %c0_i32_0 : i32, i32
  }
  func.func @transform_2(%arg0: i32) -> (i32, i32) {
    %c0_i32 = arith.constant 0 : i32
    %c0_i32_0 = arith.constant 0 : i32
    %c0_i32_1 = arith.constant 0 : i32
    return %c0_i32, %c0_i32_0 : i32, i32
  }
  func.func @transform_3(%arg0: i32) -> (i32, i32) {
    %c0_i32 = arith.constant 0 : i32
    %c0_i32_0 = arith.constant 0 : i32
    %c0_i32_1 = arith.constant 0 : i32
    return %c0_i32, %c0_i32_0 : i32, i32
  }
  func.func @transform_4(%arg0: i32) -> (i32, i32) {
    %c0_i32 = arith.constant 0 : i32
    %c0_i32_0 = arith.constant 0 : i32
    %c0_i32_1 = arith.constant 0 : i32
    return %c0_i32, %c0_i32_0 : i32, i32
  }
  func.func @transform_5(%arg0: i32) -> (i32, i32) {
    %c0_i32 = arith.constant 0 : i32
    %c0_i32_0 = arith.constant 0 : i32
    %c0_i32_1 = arith.constant 0 : i32
    return %c0_i32, %c0_i32_0 : i32, i32
  }
  func.func @transform_6(%arg0: i32) -> (i32, i32) {
    %c0_i32 = arith.constant 0 : i32
    %c0_i32_0 = arith.constant 0 : i32
    %c0_i32_1 = arith.constant 0 : i32
    return %c0_i32, %c0_i32_0 : i32, i32
  }
  func.func @transform_7(%arg0: i32) -> (i32, i32) {
    %c0_i32 = arith.constant 0 : i32
    %c0_i32_0 = arith.constant 0 : i32
    return %arg0, %c0_i32 : i32, i32
  }
}

</mosaic_0001>

<bundles_post_ra>
// kernel: decoder_prenorm.1
= control target key start
LH: loop header
LB: loop body
LE: loop exit
PB: predicated region body
PF: predicated region fallthrough
CT: control target
= control target key end

     0   :  { %vm29_vm0 = vcmask 261120   ;;  %v317_v4 = vmov 32.0   ;;  %vm158_vm8 = vcmask 523264   ;;  %vm245_vm10 = vcmask 31744   ;;  %s419_s0 = inlined_call_operand.vmem [shape: f32[16,32], index: 0, kind: input, shape index: {}]   ;;  %s420_s2 = inlined_call_operand.vmem [shape: f32[1,64], index: 2, kind: input, shape index: {}]   ;;  %s421_s1 = inlined_call_operand.vmem [shape: bf16[32,64], index: 1, kind: input, shape index: {}]   ;;  %s422_s4 = inlined_call_operand.vmem [shape: f32[1,32], index: 4, kind: input, shape index: {}]   ;;  %s423_s3 = inlined_call_operand.vmem [shape: bf16[64,32], index: 3, kind: input, shape index: {}]   ;;  %s424_s6 = inlined_call_operand.vmem [shape: f32[1,4], index: 6, kind: input, shape index: {}]   ;;  %s425_s5 = inlined_call_operand.vmem [shape: bf16[32,4], index: 5, kind: input, shape index: {}]   ;;  %s426_s7 = inlined_call_operand.vmem [shape: f32[16,4], index: 7, kind: output, shape index: {}]  }
   0x1   :  { %v361_v0 = vld [vmem:[%s419_s0] sm:$0xff]  ;;  %v368_v2 = vld [vmem:[%s419_s0 + $0x8] sm:$0xff]  ;;  %299 = vrcp.f32 %v317_v4  ;;  %v292_v46 = vld [vmem:[%s423_s3 + $0x18] sm:$0xff] }
   0x2   :  { %v30_v1 = vsel %vm29_vm0, %v361_v0, 0.0  ;;  %v33_v3 = vsel %vm29_vm0, %v368_v2, 0.0  ;;  %v288_v21 = vld [vmem:[%s421_s1 + $0x8] sm:$0xff]  ;;  %v287_v22 = vld [vmem:[%s421_s1] sm:$0xff]  ;;  %166 = vmatpush.bf16.msra.mxu1 %v292_v46  ;;  %v291_v47 = vld [vmem:[%s423_s3 + $0x10] sm:$0xff] }
   0x3   :  { %31 = vadd.xlane.f32.xlu0 %v30_v1  ;;  %111 = vmatpush.bf16.msra.mxu0 %v288_v21  ;;  %v290_v48 = vld [vmem:[%s423_s3 + $0x8] sm:$0xff]  ;;  %v289_v49 = vld [vmem:[%s423_s3] sm:$0xff] }
   0x4   :  { %v296_v51 = vld [vmem:[%s420_s2] ss:$0 sm:$0xff]  ;;  %v294_v58 = vld [vmem:[%s425_s5 + $0x8] sm:$0xff] }
   0x5   :  { %208 = vmatpush.bf16.msra.mxu2 %v294_v58  ;;  %v293_v59 = vld [vmem:[%s425_s5] sm:$0xff] }
   0x6   :  { %167 = vmatpush.bf16.msra.mxu1 %v291_v47  ;;  %v297_v61 = vld [vmem:[%s422_s4] ss:$0 sm:$0xff] }
   0x7   :  { %v300_v5 = vpop.eup %299  ;;  %112 = vmatpush.bf16.msra.mxu0 %v287_v22 }
   0x8   :  { %v37_v6 = vmul.f32 32.0, %v300_v5  ;;  %vm41_vm1 = vweird.f32 %v300_v5 }
   0x9   :  { %209 = vmatpush.bf16.msra.mxu2 %v293_v59 }
   0xa   :  { %v38_v7 = vsub.f32 1.0, %v37_v6  ;;  %168 = vmatpush.bf16.msra.mxu1 %v290_v48  ;;  %v298_v6 = vld [vmem:[%s424_s6] ss:$0 sm:$0xff] }
   0xb   :  { %34 = vadd.xlane.f32.xlu0 %v33_v3 }
   0xc   :  { %v39_v8 = vmul.f32 %v300_v5, %v38_v7 }
   0xe   :  { %v40_v9 = vadd.f32 %v300_v5, %v39_v8  ;;  %169 = vmatpush.bf16.msra.mxu1 %v289_v49 }
  0x10   :  { %v42_v10 = vsel %vm41_vm1, %v300_v5, %v40_v9 }
  0x76   :  { %v32_v11 = vpop.xlane.xlu0 %31 }
  0x77   :  { %v43_v12 = vmul.f32 %v42_v10, %v32_v11 }
  0x79   :  { %v45_v13 = vsub.f32 %v361_v0, %v43_v12 }
  0x7b   :  { %v47_v14 = vmul.f32 %v45_v13, %v45_v13 }
  0x7d   :  { %v49_v15 = vsel %vm29_vm0, %v47_v14, 0.0 }
  0x7e   :  { %50 = vadd.xlane.f32.xlu1 %v49_v15  ;;  %v35_v16 = vpop.xlane.xlu0 %34 }
  0x7f   :  { %v44_v17 = vmul.f32 %v42_v10, %v35_v16 }
  0x81   :  { %v46_v18 = vsub.f32 %v368_v2, %v44_v17  ;;  %v240_v17 = vlaneseq }
  0x83   :  { %v48_v19 = vmul.f32 %v46_v18, %v46_v18 }
  0x85   :  { %v52_v20 = vsel %vm29_vm0, %v48_v19, 0.0  ;;  %v241_v19 = vand.u32 127, %v240_v17 }
  0x86   :  { %53 = vadd.xlane.f32.xlu1 %v52_v20 }
  0x87   :  { %vm242_vm9 = vcmp.lt.s32.totalorder %v241_v19, 2 }
  0xf1   :  { %v51_v23 = vpop.xlane.xlu1 %50 }
  0xf2   :  { %v55_v24 = vmul.f32 %v51_v23, %v42_v10 }
  0xf4   :  { %v57_v25 = vadd.f32 1e-05, %v55_v24 }
  0xf6   :  { %301 = vrsqrt.f32 %v57_v25  ;;  %vm65_vm3 = vweird.f32 %v57_v25 }
  0xf9   :  { %v54_v26 = vpop.xlane.xlu1 %53 }
  0xfa   :  { %v56_v27 = vmul.f32 %v54_v26, %v42_v10 }
  0xfc   :  { %v302_v28 = vpop.eup %301  ;;  %v58_v29 = vadd.f32 1e-05, %v56_v27 }
  0xfd   :  { %v60_v30 = vmul.f32 %v302_v28, %v57_v25  ;;  %vm66_vm2 = vweird.f32 %v302_v28 }
  0xfe   :  { %303 = vrsqrt.f32 %v58_v29  ;;  %vm67_vm5 = vmor %vm65_vm3, %vm66_vm2  ;;  %vm75_vm6 = vweird.f32 %v58_v29 }
  0xff   :  { %v61_v31 = vmul.f32 %v302_v28, %v60_v30 }
 0x101   :  { %v62_v32 = vmul.f32 0.5, %v61_v31 }
 0x103   :  { %v63_v34 = vsub.f32 1.5, %v62_v32 }
 0x104   :  { %v304_v33 = vpop.eup %303 }
 0x105   :  { %v70_v35 = vmul.f32 %v304_v33, %v58_v29  ;;  %v64_v37 = vmul.f32 %v302_v28, %v63_v34  ;;  %vm76_vm4 = vweird.f32 %v304_v33 }
 0x106   :  { %vm77_vm7 = vmor %vm75_vm6, %vm76_vm4 }
 0x107   :  { %v71_v36 = vmul.f32 %v304_v33, %v70_v35  ;;  %v68_v41 = vsel %vm67_vm5, %v302_v28, %v64_v37 }
 0x108   :  { %v79_v43 = vmul.f32 %v68_v41, %v45_v13 }
 0x109   :  { %v72_v38 = vmul.f32 0.5, %v71_v36 }
 0x10b   :  { %v73_v39 = vsub.f32 1.5, %v72_v38 }
 0x10d   :  { %v74_v40 = vmul.f32 %v304_v33, %v73_v39 }
 0x10f   :  { %v78_v42 = vsel %vm77_vm7, %v304_v33, %v74_v40 }
 0x110   :  { %v80_v44 = vmul.f32 %v78_v42, %v46_v18 }
 0x112   :  { %v81_v45 = vpack.c.bf16 %v80_v44, %v79_v43 }
 0x114   :  { %260 = vmatmul.msk.bf16.vlgmr.msra.gmra.mxu0 %vm29_vm0, %v81_v45 }
 0x191   :  { %v114_v50 = vpop.f32.mrf.mxu0 }
 0x192   :  { %v115_v52 = vadd.f32 %v296_v51, %v114_v50 }
 0x194   :  { %v119_v55 = vmax.f32 %v115_v52, 0.0 }
 0x199   :  { %v116_v53 = vpop.f32.mrf.mxu0 }
 0x19a   :  { %v117_v54 = vadd.f32 %v296_v51, %v116_v53 }
 0x19c   :  { %v120_v56 = vmax.f32 %v117_v54, 0.0 }
 0x19e   :  { %v121_v57 = vpack.c.bf16 %v120_v56, %v119_v55 }
 0x1a0   :  { %277 = vmatmul.msk.bf16.vlgmr.msra.gmra.mxu1 %vm158_vm8, %v121_v57 }
 0x21d   :  { %v171_v60 = vpop.f32.mrf.mxu1 }
 0x21e   :  { %v172_v62 = vadd.f32 %v297_v61, %v171_v60 }
 0x220   :  { %v176_v3 = vadd.f32 %v172_v62, %v361_v0 }
 0x225   :  { %v173_v63 = vpop.f32.mrf.mxu1 }
 0x226   :  { %v174_v1 = vadd.f32 %v297_v61, %v173_v63 }
 0x228   :  { %v177_v4 = vadd.f32 %v174_v1, %v368_v2 }
 0x22a   :  { %v178_v5 = vpack.c.bf16 %v177_v4, %v176_v3 }
 0x22c   :  { %286 = vmatmul.msk.bf16.vlgmr.msra.gmra.mxu2 %vm29_vm0, %v178_v5 }
 0x2af   :  { %v211_v7 = vpop.f32.mrf.mxu2 }
 0x2b0   :  { %v212_v8 = vadd.f32 %v298_v6, %v211_v7 }
 0x2b2   :  { %v224_v9 = vand.u32 2147483647, %v212_v8  ;;  %v222_v24 = vmax.f32 %v212_v8, 0.0 }
 0x2b4   :  { %v226_v10 = vsub.f32 0.0, %v224_v9 }
 0x2b6   :  { %v228_v11 = vmul.f32 1.442695, %v226_v10 }
 0x2b7   :  { %v213_v12 = vpop.f32.mrf.mxu2 }
 0x2b8   :  { %305 = vpow2.f32 %v228_v11  ;;  %v214_v13 = vadd.f32 %v298_v6, %v213_v12 }
 0x2b9   :  { %307 = vtanh.f32 %v212_v8 }
 0x2ba   :  { %v225_v14 = vand.u32 2147483647, %v214_v13  ;;  %v223_v32 = vmax.f32 %v214_v13, 0.0 }
 0x2bc   :  { %v227_v15 = vsub.f32 0.0, %v225_v14 }
 0x2be   :  { %v306_v0 = vpop.eup %305  ;;  %v230_v2 = vmul.f32 1.442695, %v227_v15 }
 0x2bf   :  { %v232_v16 = vadd.f32 1.0, %v306_v0  ;;  %v308_v18 = vpop.eup %307 }
 0x2c0   :  { %309 = vpow2.f32 %v230_v2  ;;  %v218_v21 = vadd.f32 1.0, %v308_v18 }
 0x2c1   :  { %311 = vlog2.f32 %v232_v16 }
 0x2c2   :  { %313 = vtanh.f32 %v214_v13  ;;  %v220_v26 = vmul.f32 0.5, %v218_v21 }
 0x2c6   :  { %v310_v20 = vpop.eup %309 }
 0x2c7   :  { %v312_v22 = vpop.eup %311  ;;  %v233_v23 = vadd.f32 1.0, %v310_v20 }
 0x2c8   :  { %v235_v25 = vmul.f32 0.6931472, %v312_v22  ;;  %v314_v28 = vpop.eup %313 }
 0x2c9   :  { %315 = vlog2.f32 %v233_v23  ;;  %v219_v30 = vadd.f32 1.0, %v314_v28 }
 0x2ca   :  { %v238_v27 = vadd.f32 %v235_v25, %v222_v24 }
 0x2cb   :  { %v221_v34 = vmul.f32 0.5, %v219_v30 }
 0x2cc   :  { %v243_v29 = vsel %vm242_vm9, %v220_v26, %v238_v27 }
 0x2cd   :  { %246 = vst.msk [vmem:[%s426_s7] sm:$0xff] %vm245_vm10, %v243_v29 }
 0x2cf   :  { %v316_v31 = vpop.eup %315 }
 0x2d0   :  { %v237_v33 = vmul.f32 0.6931472, %v316_v31 }
 0x2d2   :  { %v239_v35 = vadd.f32 %v237_v33, %v223_v32 }
 0x2d4   :  { %v244_v36 = vsel %vm242_vm9, %v221_v34, %v239_v35 }
 0x2d5   :  { %247 = vst.msk [vmem:[%s426_s7 + $0x8] sm:$0xff] %vm245_vm10, %v244_v36 }

</bundles_post_ra>
